<compile_context>
chip_gen: v6e
topology: v6e:2x2x1
jax: 0.10.0
libtpu: 0.0.40
codegen_flags: <defaults>
</compile_context>

<pallas_src>
import functools

import jax
import jax.numpy as jnp
from jax.experimental import pallas as pl
from jax.experimental.pallas import tpu as pltpu


def _chip_caps():
    """Best-effort chip detection -> (has 2 TensorCores, per-step VMEM budget)."""
    kind = ""
    try:
        kind = getattr(jax.devices()[0], "device_kind", "") or ""
    except Exception:  # pragma: no cover - defensive
        pass
    k = kind.lower()
    if "v7" in k or "7x" in k:
        # 2 TCs, 64 MiB physical VMEM / TC, 32 MiB scoped default.
        return True, 24 << 20
    if "v6" in k:
        # 1 TC, 128 MiB physical, 32 MiB scoped default.
        return False, 24 << 20
    if "v5 lite" in k or "v5lite" in k or "v5e" in k:
        # 1 TC, 16 MiB scoped default.
        return False, 12 << 20
    if "v4" in k or "v5p" in k or "v5" in k:
        # megacore chips: 2 TCs, plenty of VMEM.
        return True, 24 << 20
    # Unknown / CPU interpret fallback: conservative.
    return False, 12 << 20


def _row_align(itemsize):
    # sublane packing requirement for the second-to-last block dim
    return {4: 8, 2: 16, 1: 32}.get(int(itemsize), 8)


def _make_loss_kernel(ns, hw, c_in, c_out, nc, full_blocks, needs_mask):
    """Builds the per-block kernel with all sizes baked in as Python ints."""

    def kernel(x_ref, y_ref, w_ref, b_ref, o_ref, acc_ref):
        # x_ref : (ns, c_in*hw)   lane-dense features (channel = hw-wide lane slice)
        # y_ref : (ns, c_out*hw)  lane-dense targets
        # w_ref : (c_in, c_out)   SMEM 1x1-conv weight (scalar reads)
        # b_ref : (c_out,)        SMEM bias
        # o_ref : (1, 1, 1)       per-split SSE partial
        # acc_ref: (ns, hw) f32   per-lane partial-sum accumulator (VMEM scratch)
        s = pl.program_id(0)   # megacore split (parallel)
        i = pl.program_id(1)   # batch-block step within split (arbitrary)

        @pl.when(i == 0)
        def _():
            acc_ref[...] = jnp.zeros_like(acc_ref)

        # 1x1 conv as VPU broadcast FMAs fused with squared-error accumulation.
        # Per-channel ref slices (static, lane-aligned) keep the live set small;
        # math stays f32 (required on v5e; bf16 inputs only quantize the data).
        blk = None
        for co in range(c_out):
            p = None
            for ci in range(c_in):
                xc = x_ref[:, ci * hw:(ci + 1) * hw].astype(jnp.float32)
                t = xc * w_ref[ci, co]
                p = t if p is None else p + t
            yc = y_ref[:, co * hw:(co + 1) * hw].astype(jnp.float32)
            d = (p + b_ref[co]) - yc
            sq = d * d
            blk = sq if blk is None else blk + sq

        if needs_mask:
            # Only trailing blocks (partial edge block of the batch, or the
            # clamped duplicate block of an uneven megacore split) pay for the
            # iota + select; interior blocks take the unmasked fast path.
            logical_block = s * pl.num_programs(1) + i

            @pl.when(logical_block >= full_blocks)
            def _():
                row = (jax.lax.broadcasted_iota(jnp.int32, (ns, 1), 0)
                       + logical_block * ns)
                # Keep the select (not a multiply): NaN/Inf in the OOB pad
                # region of the last block must not leak into the sum.
                acc_ref[...] += jnp.where(row < nc, blk, 0.0)

            @pl.when(logical_block < full_blocks)
            def _():
                acc_ref[...] += blk
        else:
            acc_ref[...] += blk

        @pl.when(i == pl.num_programs(1) - 1)
        def _():
            o_ref[...] = jnp.full((1, 1, 1), jnp.sum(acc_ref[...]), jnp.float32)

    return kernel


@functools.partial(jax.jit, static_argnames=("c_in", "c_out", "hw"))
def _batch_sse(x2d, y2d, w, b, *, c_in, c_out, hw):
    """Sum of squared errors of the FeatureInverter prior over the whole batch.

    x2d: (nc, c_in*hw)   free reshape of NCHW features (f32 or bf16)
    y2d: (nc, c_out*hw)  free reshape of NCHW target images (f32 or bf16)
    w:   (c_in, c_out)   1x1 conv weight (f32)
    b:   (c_out,)        bias (f32)
    returns scalar f32 SSE of (conv1x1(x) - y) over the whole batch.
    """
    nc = x2d.shape[0]
    x_item = jnp.dtype(x2d.dtype).itemsize
    y_item = jnp.dtype(y2d.dtype).itemsize
    row_align = max(_row_align(x_item), _row_align(y_item))

    two_tc, vmem_budget = _chip_caps()

    # Per-step footprint per batch row: double-buffered x + y blocks plus the
    # f32 per-lane accumulator row.
    per_row = 2 * hw * (c_in * x_item + c_out * y_item) + hw * 4
    ns_cap = max(row_align, (vmem_budget // per_row) // row_align * row_align)
    ns_cap = min(ns_cap, 2048)

    if nc <= ns_cap:
        ns = nc                    # block == full first dim (exempt from align)
    else:
        ns = ns_cap                # multiple of row_align by construction
    nb = pl.cdiv(nc, ns)

    n_split = 2 if (two_tc and nb >= 2) else 1
    if n_split == 2 and nb % 2 != 0:
        # Re-pick ns so the block count is even: neither TC ever fetches the
        # clamped duplicate block and both get equal work.
        ns_new = min(-(-(-(-nc // (nb + 1))) // row_align) * row_align, ns_cap)
        if 0 < ns_new <= nc:
            ns = ns_new
            nb = pl.cdiv(nc, ns)
    bps = pl.cdiv(nb, n_split)          # blocks per split
    total_logical = n_split * bps
    full_blocks = nc // ns              # blocks whose rows are all < nc
    needs_mask = total_logical * ns != nc

    if total_logical > nb:
        # Uneven split (rare after the re-pick): clamp and let the row mask
        # zero the duplicated block's contribution.
        def data_index_map(s, i):
            return (jnp.minimum(s * bps + i, nb - 1), 0)
    else:
        def data_index_map(s, i):
            return (s * bps + i, 0)

    # VMEM limit derived from the actual requirement (double-buffered blocks +
    # accumulator) with headroom, instead of a fixed constant.
    need = (2 * ns * hw * (c_in * x_item + c_out * y_item)) + ns * hw * 4
    vmem_limit = int(max(need + (8 << 20), 16 << 20))

    partials = pl.pallas_call(
        _make_loss_kernel(ns, hw, c_in, c_out, nc, full_blocks, needs_mask),
        out_shape=jax.ShapeDtypeStruct((n_split, 1, 1), jnp.float32),
        grid=(n_split, bps),
        in_specs=[
            pl.BlockSpec((ns, c_in * hw), data_index_map),
            pl.BlockSpec((ns, c_out * hw), data_index_map),
            pl.BlockSpec(memory_space=pltpu.MemorySpace.SMEM),   # w
            pl.BlockSpec(memory_space=pltpu.MemorySpace.SMEM),   # b
        ],
        out_specs=pl.BlockSpec((1, 1, 1), lambda s, i: (s, 0, 0)),
        scratch_shapes=[pltpu.VMEM((ns, hw), jnp.float32)],
        compiler_params=pltpu.CompilerParams(
            dimension_semantics=("parallel", "arbitrary"),
            vmem_limit_bytes=vmem_limit,
        ),
    )(x2d, y2d, w, b)

    return jnp.sum(partials)   # sum per-core partials -> batch SSE


class FeatureInverterTrainerPallas:
    """JAX/Pallas equivalent of FeatureInverterTrainer.forward (inference path)."""

    def __init__(self, c_in=4, c_out=4, key=jax.random.PRNGKey(42)):
        kw, kb = jax.random.split(key)
        # Deterministic synthetic parameters of the FeatureInverter prior
        # (1x1 conv: features C_in -> image C_out).
        self.w = (jax.random.normal(kw, (c_in, c_out), jnp.float32)
                  * (1.0 / jnp.sqrt(c_in)))
        self.b = jax.random.normal(kb, (c_out,), jnp.float32) * 0.01
        # TODO(synk): optimizer / scheduler / EMA / checkpoint / backward logic of
        # the trainer has no forward-pass compute and is not reproduced here.

    def prior_loss(self, x_batch, y_batch):
        """MSE loss of the FeatureInverter prior over a batch (NCHW inputs)."""
        nc, c_in, h, w = x_batch.shape
        c_out = y_batch.shape[1]
        hw = h * w
        hw_pad = -(-hw // 128) * 128
        if hw_pad == hw:
            # NCHW -> (N, C*H*W): a free, contiguous reshape (no transpose pass).
            x2d = x_batch.reshape(nc, c_in * hw)
            y2d = y_batch.reshape(nc, c_out * hw)
        else:
            # Keep the in-kernel channel slices on lane (128) boundaries: pad
            # x with 0 and y with the bias so the padded region contributes
            # (b - b)^2 == 0 to the SSE (up to the dtype rounding of b).
            pad = hw_pad - hw
            x3 = jnp.pad(x_batch.reshape(nc, c_in, hw), ((0, 0), (0, 0), (0, pad)))
            ypad = jnp.broadcast_to(self.b[None, :, None],
                                    (nc, c_out, pad)).astype(y_batch.dtype)
            y3 = jnp.concatenate([y_batch.reshape(nc, c_out, hw), ypad], axis=-1)
            x2d = x3.reshape(nc, c_in * hw_pad)
            y2d = y3.reshape(nc, c_out * hw_pad)
        sse = _batch_sse(x2d, y2d, self.w, self.b,
                         c_in=c_in, c_out=c_out, hw=hw_pad)
        # Mean over the *original* number of elements.
        return sse / jnp.float32(nc * hw * c_out)

    def forward(self, x, y, max_batch_size=None):
        """Mirrors FeatureInverterTrainer.forward.

        sum_c chunk_size_frac_c * MSE_c is mathematically identical to the
        full-batch MSE, and the kernel already streams the batch in ns-row
        blocks, so host-side chunking would only add dispatches/recompiles.
        `max_batch_size` is accepted for API parity and ignored.
        """
        del max_batch_size
        loss = self.prior_loss(x, y)
        # single host sync / .item() equivalent at the very end
        return float(jax.block_until_ready(loss))


if __name__ == "__main__":
    # small shapes consistent with the module: batch=2, channels=4, spatial=16
    N, C_IN, C_OUT, H, W = 2, 4, 4, 16, 16

    key = jax.random.PRNGKey(0)
    kx, ky = jax.random.split(key)
    x = jax.random.normal(kx, (N, C_IN, H, W), jnp.float32)   # NCHW features
    y = jax.random.normal(ky, (N, C_OUT, H, W), jnp.float32)  # NCHW targets

    trainer = FeatureInverterTrainerPallas(c_in=C_IN, c_out=C_OUT)

    # exercise both the "chunked" API and the plain path (identical math)
    total_chunked = trainer.forward(x, y, max_batch_size=1)
    total_full = trainer.forward(x, y)

    # sanity check against a pure-JAX reference
    def ref_loss(x, y, w, b):
        xt = jnp.transpose(x, (0, 2, 3, 1)).reshape(N, H * W, C_IN)
        yt = jnp.transpose(y, (0, 2, 3, 1)).reshape(N, H * W, C_OUT)
        proj = xt @ w + b[None, None, :]
        return jnp.mean((proj - yt) ** 2)

    ref = float(jax.block_until_ready(ref_loss(x, y, trainer.w, trainer.b)))
    assert abs(total_chunked - ref) < 1e-4, (total_chunked, ref)
    assert abs(total_full - ref) < 1e-4, (total_full, ref)

    # bf16-storage path (halves HBM traffic; in-kernel math stays f32) — the
    # inputs are quantized so only a loose tolerance is expected/asserted.
    total_bf16 = trainer.forward(x.astype(jnp.bfloat16), y.astype(jnp.bfloat16))
    assert abs(total_bf16 - ref) < 0.05 * max(abs(ref), 1.0), (total_bf16, ref)

    print("KERNEL_OK")
</pallas_src>

<mosaic_0001>
module attributes {stable_mosaic.version = 11 : i64} {
  func.func @kernel(%arg0: i32, %arg1: i32, %arg2: memref<2x1024xf32, #tpu.memory_space<vmem>>, %arg3: memref<2x1024xf32, #tpu.memory_space<vmem>>, %arg4: memref<4x4xf32, #tpu.memory_space<smem>>, %arg5: memref<4xf32, #tpu.memory_space<smem>>, %arg6: memref<1x1x1xf32, #tpu.memory_space<vmem>>, %arg7: memref<2x256xf32, #tpu.memory_space<vmem>>) attributes {dimension_semantics = [#tpu.dimension_semantics<parallel>, #tpu.dimension_semantics<arbitrary>], iteration_bounds = array<i64: 1, 1>, scalar_prefetch = 0 : i64, scratch_operands = 1 : i64, tpu.core_type = #tpu.core_type<tc>, window_params = [{transform_indices = @transform_0, window_bounds = array<i64: 2, 1024>}, {transform_indices = @transform_1, window_bounds = array<i64: 2, 1024>}, {transform_indices = @transform_2, window_bounds = array<i64: 4, 4>}, {transform_indices = @transform_3, window_bounds = array<i64: 4>}, {transform_indices = @transform_4, window_bounds = array<i64: 1, 1, 1>}]} {
    %c0_i32 = arith.constant 0 : i32
    %0 = arith.cmpi eq, %arg1, %c0_i32 : i32
    %1 = arith.extui %0 : i1 to i32
    %c0_i32_0 = arith.constant 0 : i32
    %2 = arith.cmpi ne, %1, %c0_i32_0 : i32
    scf.if %2 {
      %cst = arith.constant 0.000000e+00 : f32
      %112 = vector.broadcast %cst : f32 to vector<2x256xf32>
      %c0_76 = arith.constant 0 : index
      %c0_77 = arith.constant 0 : index
      %113 = vector.load %arg7[%c0_76, %c0_77] : memref<2x256xf32, #tpu.memory_space<vmem>>, vector<2x256xf32>
      tpu.vector_store %arg7[%c0_76, %c0_77], %112 {strides = array<i32>} : memref<2x256xf32, #tpu.memory_space<vmem>>, vector<2x256xf32>,
    } else {
    }
    %c0 = arith.constant 0 : index
    %c0_1 = arith.constant 0 : index
    %3 = vector.load %arg2[%c0, %c0_1] : memref<2x1024xf32, #tpu.memory_space<vmem>>, vector<2x256xf32>
    %c0_2 = arith.constant 0 : index
    %c0_3 = arith.constant 0 : index
    %4 = memref.load %arg4[%c0_2, %c0_3] : memref<4x4xf32, #tpu.memory_space<smem>>
    %5 = vector.broadcast %4 : f32 to vector<2x256xf32>
    %6 = arith.mulf %3, %5 : vector<2x256xf32>
    %c0_4 = arith.constant 0 : index
    %c256 = arith.constant 256 : index
    %7 = vector.load %arg2[%c0_4, %c256] : memref<2x1024xf32, #tpu.memory_space<vmem>>, vector<2x256xf32>
    %c1 = arith.constant 1 : index
    %c0_5 = arith.constant 0 : index
    %8 = memref.load %arg4[%c1, %c0_5] : memref<4x4xf32, #tpu.memory_space<smem>>
    %9 = vector.broadcast %8 : f32 to vector<2x256xf32>
    %10 = arith.mulf %7, %9 : vector<2x256xf32>
    %11 = arith.addf %6, %10 : vector<2x256xf32>
    %c0_6 = arith.constant 0 : index
    %c512 = arith.constant 512 : index
    %12 = vector.load %arg2[%c0_6, %c512] : memref<2x1024xf32, #tpu.memory_space<vmem>>, vector<2x256xf32>
    %c2 = arith.constant 2 : index
    %c0_7 = arith.constant 0 : index
    %13 = memref.load %arg4[%c2, %c0_7] : memref<4x4xf32, #tpu.memory_space<smem>>
    %14 = vector.broadcast %13 : f32 to vector<2x256xf32>
    %15 = arith.mulf %12, %14 : vector<2x256xf32>
    %16 = arith.addf %11, %15 : vector<2x256xf32>
    %c0_8 = arith.constant 0 : index
    %c768 = arith.constant 768 : index
    %17 = vector.load %arg2[%c0_8, %c768] : memref<2x1024xf32, #tpu.memory_space<vmem>>, vector<2x256xf32>
    %c3 = arith.constant 3 : index
    %c0_9 = arith.constant 0 : index
    %18 = memref.load %arg4[%c3, %c0_9] : memref<4x4xf32, #tpu.memory_space<smem>>
    %19 = vector.broadcast %18 : f32 to vector<2x256xf32>
    %20 = arith.mulf %17, %19 : vector<2x256xf32>
    %21 = arith.addf %16, %20 : vector<2x256xf32>
    %c0_10 = arith.constant 0 : index
    %c0_11 = arith.constant 0 : index
    %22 = vector.load %arg3[%c0_10, %c0_11] : memref<2x1024xf32, #tpu.memory_space<vmem>>, vector<2x256xf32>
    %c0_12 = arith.constant 0 : index
    %23 = memref.load %arg5[%c0_12] : memref<4xf32, #tpu.memory_space<smem>>
    %24 = vector.broadcast %23 : f32 to vector<2x256xf32>
    %25 = arith.addf %21, %24 : vector<2x256xf32>
    %26 = arith.subf %25, %22 : vector<2x256xf32>
    %27 = arith.mulf %26, %26 : vector<2x256xf32>
    %c0_13 = arith.constant 0 : index
    %c0_14 = arith.constant 0 : index
    %28 = vector.load %arg2[%c0_13, %c0_14] : memref<2x1024xf32, #tpu.memory_space<vmem>>, vector<2x256xf32>
    %c0_15 = arith.constant 0 : index
    %c1_16 = arith.constant 1 : index
    %29 = memref.load %arg4[%c0_15, %c1_16] : memref<4x4xf32, #tpu.memory_space<smem>>
    %30 = vector.broadcast %29 : f32 to vector<2x256xf32>
    %31 = arith.mulf %28, %30 : vector<2x256xf32>
    %c0_17 = arith.constant 0 : index
    %c256_18 = arith.constant 256 : index
    %32 = vector.load %arg2[%c0_17, %c256_18] : memref<2x1024xf32, #tpu.memory_space<vmem>>, vector<2x256xf32>
    %c1_19 = arith.constant 1 : index
    %c1_20 = arith.constant 1 : index
    %33 = memref.load %arg4[%c1_19, %c1_20] : memref<4x4xf32, #tpu.memory_space<smem>>
    %34 = vector.broadcast %33 : f32 to vector<2x256xf32>
    %35 = arith.mulf %32, %34 : vector<2x256xf32>
    %36 = arith.addf %31, %35 : vector<2x256xf32>
    %c0_21 = arith.constant 0 : index
    %c512_22 = arith.constant 512 : index
    %37 = vector.load %arg2[%c0_21, %c512_22] : memref<2x1024xf32, #tpu.memory_space<vmem>>, vector<2x256xf32>
    %c2_23 = arith.constant 2 : index
    %c1_24 = arith.constant 1 : index
    %38 = memref.load %arg4[%c2_23, %c1_24] : memref<4x4xf32, #tpu.memory_space<smem>>
    %39 = vector.broadcast %38 : f32 to vector<2x256xf32>
    %40 = arith.mulf %37, %39 : vector<2x256xf32>
    %41 = arith.addf %36, %40 : vector<2x256xf32>
    %c0_25 = arith.constant 0 : index
    %c768_26 = arith.constant 768 : index
    %42 = vector.load %arg2[%c0_25, %c768_26] : memref<2x1024xf32, #tpu.memory_space<vmem>>, vector<2x256xf32>
    %c3_27 = arith.constant 3 : index
    %c1_28 = arith.constant 1 : index
    %43 = memref.load %arg4[%c3_27, %c1_28] : memref<4x4xf32, #tpu.memory_space<smem>>
    %44 = vector.broadcast %43 : f32 to vector<2x256xf32>
    %45 = arith.mulf %42, %44 : vector<2x256xf32>
    %46 = arith.addf %41, %45 : vector<2x256xf32>
    %c0_29 = arith.constant 0 : index
    %c256_30 = arith.constant 256 : index
    %47 = vector.load %arg3[%c0_29, %c256_30] : memref<2x1024xf32, #tpu.memory_space<vmem>>, vector<2x256xf32>
    %c1_31 = arith.constant 1 : index
    %48 = memref.load %arg5[%c1_31] : memref<4xf32, #tpu.memory_space<smem>>
    %49 = vector.broadcast %48 : f32 to vector<2x256xf32>
    %50 = arith.addf %46, %49 : vector<2x256xf32>
    %51 = arith.subf %50, %47 : vector<2x256xf32>
    %52 = arith.mulf %51, %51 : vector<2x256xf32>
    %53 = arith.addf %27, %52 : vector<2x256xf32>
    %c0_32 = arith.constant 0 : index
    %c0_33 = arith.constant 0 : index
    %54 = vector.load %arg2[%c0_32, %c0_33] : memref<2x1024xf32, #tpu.memory_space<vmem>>, vector<2x256xf32>
    %c0_34 = arith.constant 0 : index
    %c2_35 = arith.constant 2 : index
    %55 = memref.load %arg4[%c0_34, %c2_35] : memref<4x4xf32, #tpu.memory_space<smem>>
    %56 = vector.broadcast %55 : f32 to vector<2x256xf32>
    %57 = arith.mulf %54, %56 : vector<2x256xf32>
    %c0_36 = arith.constant 0 : index
    %c256_37 = arith.constant 256 : index
    %58 = vector.load %arg2[%c0_36, %c256_37] : memref<2x1024xf32, #tpu.memory_space<vmem>>, vector<2x256xf32>
    %c1_38 = arith.constant 1 : index
    %c2_39 = arith.constant 2 : index
    %59 = memref.load %arg4[%c1_38, %c2_39] : memref<4x4xf32, #tpu.memory_space<smem>>
    %60 = vector.broadcast %59 : f32 to vector<2x256xf32>
    %61 = arith.mulf %58, %60 : vector<2x256xf32>
    %62 = arith.addf %57, %61 : vector<2x256xf32>
    %c0_40 = arith.constant 0 : index
    %c512_41 = arith.constant 512 : index
    %63 = vector.load %arg2[%c0_40, %c512_41] : memref<2x1024xf32, #tpu.memory_space<vmem>>, vector<2x256xf32>
    %c2_42 = arith.constant 2 : index
    %c2_43 = arith.constant 2 : index
    %64 = memref.load %arg4[%c2_42, %c2_43] : memref<4x4xf32, #tpu.memory_space<smem>>
    %65 = vector.broadcast %64 : f32 to vector<2x256xf32>
    %66 = arith.mulf %63, %65 : vector<2x256xf32>
    %67 = arith.addf %62, %66 : vector<2x256xf32>
    %c0_44 = arith.constant 0 : index
    %c768_45 = arith.constant 768 : index
    %68 = vector.load %arg2[%c0_44, %c768_45] : memref<2x1024xf32, #tpu.memory_space<vmem>>, vector<2x256xf32>
    %c3_46 = arith.constant 3 : index
    %c2_47 = arith.constant 2 : index
    %69 = memref.load %arg4[%c3_46, %c2_47] : memref<4x4xf32, #tpu.memory_space<smem>>
    %70 = vector.broadcast %69 : f32 to vector<2x256xf32>
    %71 = arith.mulf %68, %70 : vector<2x256xf32>
    %72 = arith.addf %67, %71 : vector<2x256xf32>
    %c0_48 = arith.constant 0 : index
    %c512_49 = arith.constant 512 : index
    %73 = vector.load %arg3[%c0_48, %c512_49] : memref<2x1024xf32, #tpu.memory_space<vmem>>, vector<2x256xf32>
    %c2_50 = arith.constant 2 : index
    %74 = memref.load %arg5[%c2_50] : memref<4xf32, #tpu.memory_space<smem>>
    %75 = vector.broadcast %74 : f32 to vector<2x256xf32>
    %76 = arith.addf %72, %75 : vector<2x256xf32>
    %77 = arith.subf %76, %73 : vector<2x256xf32>
    %78 = arith.mulf %77, %77 : vector<2x256xf32>
    %79 = arith.addf %53, %78 : vector<2x256xf32>
    %c0_51 = arith.constant 0 : index
    %c0_52 = arith.constant 0 : index
    %80 = vector.load %arg2[%c0_51, %c0_52] : memref<2x1024xf32, #tpu.memory_space<vmem>>, vector<2x256xf32>
    %c0_53 = arith.constant 0 : index
    %c3_54 = arith.constant 3 : index
    %81 = memref.load %arg4[%c0_53, %c3_54] : memref<4x4xf32, #tpu.memory_space<smem>>
    %82 = vector.broadcast %81 : f32 to vector<2x256xf32>
    %83 = arith.mulf %80, %82 : vector<2x256xf32>
    %c0_55 = arith.constant 0 : index
    %c256_56 = arith.constant 256 : index
    %84 = vector.load %arg2[%c0_55, %c256_56] : memref<2x1024xf32, #tpu.memory_space<vmem>>, vector<2x256xf32>
    %c1_57 = arith.constant 1 : index
    %c3_58 = arith.constant 3 : index
    %85 = memref.load %arg4[%c1_57, %c3_58] : memref<4x4xf32, #tpu.memory_space<smem>>
    %86 = vector.broadcast %85 : f32 to vector<2x256xf32>
    %87 = arith.mulf %84, %86 : vector<2x256xf32>
    %88 = arith.addf %83, %87 : vector<2x256xf32>
    %c0_59 = arith.constant 0 : index
    %c512_60 = arith.constant 512 : index
    %89 = vector.load %arg2[%c0_59, %c512_60] : memref<2x1024xf32, #tpu.memory_space<vmem>>, vector<2x256xf32>
    %c2_61 = arith.constant 2 : index
    %c3_62 = arith.constant 3 : index
    %90 = memref.load %arg4[%c2_61, %c3_62] : memref<4x4xf32, #tpu.memory_space<smem>>
    %91 = vector.broadcast %90 : f32 to vector<2x256xf32>
    %92 = arith.mulf %89, %91 : vector<2x256xf32>
    %93 = arith.addf %88, %92 : vector<2x256xf32>
    %c0_63 = arith.constant 0 : index
    %c768_64 = arith.constant 768 : index
    %94 = vector.load %arg2[%c0_63, %c768_64] : memref<2x1024xf32, #tpu.memory_space<vmem>>, vector<2x256xf32>
    %c3_65 = arith.constant 3 : index
    %c3_66 = arith.constant 3 : index
    %95 = memref.load %arg4[%c3_65, %c3_66] : memref<4x4xf32, #tpu.memory_space<smem>>
    %96 = vector.broadcast %95 : f32 to vector<2x256xf32>
    %97 = arith.mulf %94, %96 : vector<2x256xf32>
    %98 = arith.addf %93, %97 : vector<2x256xf32>
    %c0_67 = arith.constant 0 : index
    %c768_68 = arith.constant 768 : index
    %99 = vector.load %arg3[%c0_67, %c768_68] : memref<2x1024xf32, #tpu.memory_space<vmem>>, vector<2x256xf32>
    %c3_69 = arith.constant 3 : index
    %100 = memref.load %arg5[%c3_69] : memref<4xf32, #tpu.memory_space<smem>>
    %101 = vector.broadcast %100 : f32 to vector<2x256xf32>
    %102 = arith.addf %98, %101 : vector<2x256xf32>
    %103 = arith.subf %102, %99 : vector<2x256xf32>
    %104 = arith.mulf %103, %103 : vector<2x256xf32>
    %105 = arith.addf %79, %104 : vector<2x256xf32>
    %c0_70 = arith.constant 0 : index
    %c0_71 = arith.constant 0 : index
    %106 = vector.load %arg7[%c0_70, %c0_71] : memref<2x256xf32, #tpu.memory_space<vmem>>, vector<2x256xf32>
    %107 = arith.addf %106, %105 : vector<2x256xf32>
    %c0_72 = arith.constant 0 : index
    %c0_73 = arith.constant 0 : index
    %108 = vector.load %arg7[%c0_72, %c0_73] : memref<2x256xf32, #tpu.memory_space<vmem>>, vector<2x256xf32>
    tpu.vector_store %arg7[%c0_72, %c0_73], %107 {strides = array<i32>} : memref<2x256xf32, #tpu.memory_space<vmem>>, vector<2x256xf32>,
    %c0_i32_74 = arith.constant 0 : i32
    %109 = arith.cmpi eq, %arg1, %c0_i32_74 : i32
    %110 = arith.extui %109 : i1 to i32
    %c0_i32_75 = arith.constant 0 : i32
    %111 = arith.cmpi ne, %110, %c0_i32_75 : i32
    scf.if %111 {
      %c0_76 = arith.constant 0 : index
      %c0_77 = arith.constant 0 : index
      %112 = vector.load %arg7[%c0_76, %c0_77] : memref<2x256xf32, #tpu.memory_space<vmem>>, vector<2x256xf32>
      %113 = vector.shape_cast %112 : vector<2x256xf32> to vector<1x2x256xf32>
      %cst = arith.constant dense<0.000000e+00> : vector<1xf32>
      %114 = vector.multi_reduction <add>, %113, %cst [1, 2] : vector<1x2x256xf32> to vector<1xf32>
      %115 = vector.shape_cast %114 : vector<1xf32> to vector<1x1x1xf32>
      %116 = vector.extract %115[0, 0, 0] : f32 from vector<1x1x1xf32>
      %117 = vector.broadcast %116 : f32 to vector<1x1x1xf32>
      %c0_78 = arith.constant 0 : index
      %c0_79 = arith.constant 0 : index
      %c0_80 = arith.constant 0 : index
      %118 = vector.load %arg6[%c0_78, %c0_79, %c0_80] : memref<1x1x1xf32, #tpu.memory_space<vmem>>, vector<1x1x1xf32>
      tpu.vector_store %arg6[%c0_78, %c0_79, %c0_80], %117 {strides = array<i32>} : memref<1x1x1xf32, #tpu.memory_space<vmem>>, vector<1x1x1xf32>,
    } else {
    }
    return
  }
  func.func @transform_0(%arg0: i32, %arg1: i32) -> (i32, i32) {
    %c1_i32 = arith.constant 1 : i32
    %0 = arith.muli %arg0, %c1_i32 : i32
    %1 = arith.addi %0, %arg1 : i32
    %c0_i32 = arith.constant 0 : i32
    %c0_i32_0 = arith.constant 0 : i32
    return %1, %c0_i32 : i32, i32
  }
  func.func @transform_1(%arg0: i32, %arg1: i32) -> (i32, i32) {
    %c1_i32 = arith.constant 1 : i32
    %0 = arith.muli %arg0, %c1_i32 : i32
    %1 = arith.addi %0, %arg1 : i32
    %c0_i32 = arith.constant 0 : i32
    %c0_i32_0 = arith.constant 0 : i32
    return %1, %c0_i32 : i32, i32
  }
  func.func @transform_2(%arg0: i32, %arg1: i32) -> (i32, i32) {
    %c0_i32 = arith.constant 0 : i32
    %c0_i32_0 = arith.constant 0 : i32
    %c0_i32_1 = arith.constant 0 : i32
    return %c0_i32, %c0_i32_0 : i32, i32
  }
  func.func @transform_3(%arg0: i32, %arg1: i32) -> i32 {
    %c0_i32 = arith.constant 0 : i32
    %c0_i32_0 = arith.constant 0 : i32
    return %c0_i32 : i32
  }
  func.func @transform_4(%arg0: i32, %arg1: i32) -> (i32, i32, i32) {
    %c0_i32 = arith.constant 0 : i32
    %c0_i32_0 = arith.constant 0 : i32
    %c0_i32_1 = arith.constant 0 : i32
    return %arg0, %c0_i32, %c0_i32_0 : i32, i32, i32
  }
}

</mosaic_0001>

<bundles_post_ra>
// kernel: _batch_sse.1
= control target key start
LH: loop header
LB: loop body
LE: loop exit
PB: predicated region body
PF: predicated region fallthrough
CT: control target
= control target key end

     0   :  { %9 = vsyncpa [#allocation4], 0  ;;  %s401_s0 = inlined_call_operand.hbm [shape: f32[2,1024], index: 0, kind: input, shape index: {}]   ;;  %s402_s1 = inlined_call_operand.hbm [shape: f32[2,1024], index: 1, kind: input, shape index: {}]   ;;  %s403_s2 = inlined_call_operand.hbm [shape: f32[4,4], index: 2, kind: input, shape index: {}]   ;;  %s404_s3 = inlined_call_operand.vmem [shape: f32[4], index: 3, kind: input, shape index: {}]   ;;  %s405_s4 = inlined_call_operand.hbm [shape: f32[1,1,1], index: 4, kind: output, shape index: {}]  }
   0x1   :  { %10 = vsyncpa [#allocation9], 0 }
   0x2   :  { %11 = vsyncpa [#allocation6], 0 }
   0x3   :  { %12 = vsyncpa [#allocation7], 0 }
   0x4   :  { %13 = vsyncpa [#allocation5], 0  ;;  %s340_s15 = smov [#allocation3]   ;;  %s341_s17 = smov [#allocation8]  }
   0x5   :  { %s24_s16 = sshll.u32 %s340_s15, 4  ;;  %s38_s18 = sshll.u32 %s341_s17, 4  ;;  %s25_s16 = int_to_ptr.vmem [resolvable:$true] %s24_s16  ;;  %s39_s18 = int_to_ptr.vmem [resolvable:$true] %s38_s18 }
   0x6   :  { %s258_s19 = scalar_lea.vmem %s25_s16, 256  ;;  %p263_p1 = scmp.lt.s32.totalorder %s25_s16, %s25_s16 }
   0x7   :  { %p259_p0 = scmp.ne.s32.totalorder %s25_s16, %s258_s19  ;;  %p264_p2 = scmp.lt.s32.totalorder %s258_s19, %s258_s19 }
   0x9   :  { %p265_p3 = por %p264_p2, %p263_p1 }
   0xb   :  { %p266_p4 = pnand %p265_p3, %p259_p0 }
   0xd   :  { %269 = shalt.err (!%p266_p4)
}
   0xe   :  { %27 = dma.hbm_to_vmem [thread:$0]  %s401_s0, 256, %s25_s16, [#allocation4]  }
   0xf   :  { %s278_s22 = scalar_lea.vmem %s39_s18, 256  ;;  %p283_p6 = scmp.lt.s32.totalorder %s39_s18, %s39_s18 }
  0x10   :  { %p279_p5 = scmp.ne.s32.totalorder %s39_s18, %s278_s22  ;;  %p284_p7 = scmp.lt.s32.totalorder %s278_s22, %s278_s22 }
  0x12   :  { %p285_p8 = por %p284_p7, %p283_p6 }
  0x14   :  { %p286_p9 = pnand %p285_p8, %p279_p5 }
  0x16   :  { %289 = shalt.err (!%p286_p9)
}
  0x17   :  { %41 = dma.hbm_to_vmem [thread:$0]  %s402_s1, 256, %s39_s18, [#allocation9]  }
  0x18   :  { %s56_s27 = sshll.u32 %s404_s3, 4  ;;  %s342_s28 = smov [#allocation10]   ;;  %s57_s27 = int_to_ptr.vmem [resolvable:$true] %s56_s27 }
  0x19   :  { %49 = dma.hbm_to_smem %s403_s2, 64, %s342_s28, [#allocation6]  }
  0x1a   :  { %s298_s0 = scalar_lea.vmem %s57_s27, 16  ;;  %p303_p11 = scmp.lt.s32.totalorder %s57_s27, %s57_s27 }
  0x1b   :  { %p299_p10 = scmp.ne.s32.totalorder %s57_s27, %s298_s0  ;;  %p304_p12 = scmp.lt.s32.totalorder %s298_s0, %s298_s0 }
  0x1d   :  { %p305_p13 = por %p304_p12, %p303_p11 }
  0x1f   :  { %p306_p0 = pnand %p305_p13, %p299_p10 }
  0x21   :  { %309 = shalt.err (!%p306_p0)
}
  0x22   :  { %s343_s5 = smov [#allocation11]  }
  0x23   :  { %59 = dma.vmem_to_smem %s57_s27, 16, %s343_s5, [#allocation7]  }
  0x24   :  { %330 = dma.done.wait [#allocation4], 256  }
  0x25   :  { %331 = vsyncadd [#allocation4], 4294967040 }
  0x26   :  { %332 = dma.done.wait [#allocation9], 256  }
  0x27   :  { %333 = vsyncadd [#allocation9], 4294967040 }
  0x28   :  { %334 = dma.done.wait [#allocation6], 64  }
  0x29   :  { %335 = vsyncadd [#allocation6], 4294967232 }
  0x2a   :  { %336 = dma.done.wait [#allocation7], 16  }
  0x2b   :  { %337 = vsyncadd [#allocation7], 4294967280 }
  0x2c   :  { %72 = sfence }
  0x2d   :  { %s81_s1 = sld [smem:[#allocation10]]  ;;  %v344_v0 = vmov 0.0   ;;  %v80_v1 = vld [vmem:[#allocation3] sm:$0xf]  ;;  %v84_v2 = vld [vmem:[#allocation3 + $0x4] sm:$0xf] }
  0x2e   :  { %79 = vst [vmem:[#allocation2] sm:$0xf] %v344_v0  ;;  %s223_s2 = sld [smem:[#allocation10 + $0x80]]  ;;  %v89_v4 = vld [vmem:[#allocation3 + $0x8] sm:$0xf]  ;;  %vm189_vm0 = vcmask 1041408  }
  0x2f   :  { %s224_s3 = sld [smem:[#allocation10 + $0x100]]  ;;  %v385_v7 = vld [vmem:[#allocation3 + $0xc] sm:$0xf]  ;;  %v99_v31 = vld [vmem:[#allocation8] sm:$0xf]  ;;  %s345_s23 = smov [#allocation12]  }
  0x30   :  { %s225_s6 = sld [smem:[#allocation10 + $0x180]]  ;;  %v120_v38 = vld [vmem:[#allocation8 + $0x4] sm:$0xf]  ;;  %v142_v56 = vld [vmem:[#allocation8 + $0x8] sm:$0xf]  ;;  %s211_s24 = sshll.u32 %s345_s23, 4  ;;  %s212_s24 = int_to_ptr.vmem [resolvable:$true] %s211_s24 }
  0x31   :  { %s383_s7 = sld [smem:[#allocation11]]  ;;  %vm203_vm1 = vcmask 0   ;;  %s310_s26 = scalar_lea.vmem %s212_s24, 16 }
  0x32   :  { %s226_s8 = sld [smem:[#allocation10 + $0x1]]  ;;  %p311_p1 = scmp.ne.s32.totalorder %s212_s24, %s310_s26 }
  0x33   :  { %v82_v3 = vstv %s81_s1  ;;  %s227_s9 = sld [smem:[#allocation10 + $0x81]]  ;;  %s314_s27 = scalar_lea.vmem %s212_s24, 32 }
  0x34   :  { %v83_v5 = vmul.f32 %v82_v3, %v80_v1  ;;  %v86_v6 = vstv %s223_s2  ;;  %s228_s10 = sld [smem:[#allocation10 + $0x101]]  ;;  %v164_v3 = vld [vmem:[#allocation8 + $0xc] sm:$0xf]  ;;  %p315_p2 = scmp.lt.s32.totalorder %s212_s24, %s212_s24 }
  0x35   :  { %v87_v8 = vmul.f32 %v86_v6, %v84_v2  ;;  %v91_v9 = vstv %s224_s3  ;;  %s229_s11 = sld [smem:[#allocation10 + $0x181]]  ;;  %p316_p3 = scmp.lt.s32.totalorder %s314_s27, %s310_s26 }
  0x36   :  { %v92_v10 = vmul.f32 %v91_v9, %v89_v4  ;;  %v96_v11 = vstv %s225_s6  ;;  %s387_s12 = sld [smem:[#allocation11 + $0x1]] }
  0x37   :  { %v88_v12 = vadd.f32 %v87_v8, %v83_v5  ;;  %v97_v13 = vmul.f32 %v96_v11, %v385_v7  ;;  %s231_s13 = sld [smem:[#allocation10 + $0x2]]  ;;  %v101_v21 = vstv %s383_s7  ;;  %p317_p4 = por %p316_p3, %p315_p2 }
  0x38   :  { %v106_v14 = vstv %s226_s8  ;;  %s232_s14 = sld [smem:[#allocation10 + $0x82]] }
  0x39   :  { %v93_v15 = vadd.f32 %v92_v10, %v88_v12  ;;  %v107_v16 = vmul.f32 %v106_v14, %v80_v1  ;;  %v109_v17 = vstv %s227_s9  ;;  %s233_s15 = sld [smem:[#allocation10 + $0x102]]  ;;  %p318_p5 = pnand %p317_p4, %p311_p1 }
  0x3a   :  { %v110_v18 = vmul.f32 %v109_v17, %v84_v2  ;;  %v113_v19 = vstv %s228_s10  ;;  %s234_s16 = sld [smem:[#allocation10 + $0x182]] }
  0x3b   :  { %v98_v20 = vadd.f32 %v97_v13, %v93_v15  ;;  %v114_v22 = vmul.f32 %v113_v19, %v89_v4  ;;  %v117_v23 = vstv %s229_s11  ;;  %s391_s17 = sld [smem:[#allocation11 + $0x2]] }
  0x3c   :  { %v111_v24 = vadd.f32 %v110_v18, %v107_v16  ;;  %v118_v25 = vmul.f32 %v117_v23, %v385_v7  ;;  %s236_s18 = sld [smem:[#allocation10 + $0x3]]  ;;  %v122_v32 = vstv %s387_s12 }
  0x3d   :  { %v128_v26 = vstv %s231_s13  ;;  %s237_s19 = sld [smem:[#allocation10 + $0x83]]  ;;  %v102_v27 = vadd.f32 %v101_v21, %v98_v20 }
  0x3e   :  { %v115_v28 = vadd.f32 %v114_v22, %v111_v24  ;;  %v129_v29 = vmul.f32 %v128_v26, %v80_v1  ;;  %v131_v30 = vstv %s232_s14  ;;  %s238_s20 = sld [smem:[#allocation10 + $0x103]] }
  0x3f   :  { %v132_v33 = vmul.f32 %v131_v30, %v84_v2  ;;  %v135_v34 = vstv %s233_s15  ;;  %s239_s21 = sld [smem:[#allocation10 + $0x183]]  ;;  %v103_v41 = vsub.f32 %v102_v27, %v99_v31 }
  0x40   :  { %v119_v35 = vadd.f32 %v118_v25, %v115_v28  ;;  %v136_v36 = vmul.f32 %v135_v34, %v89_v4  ;;  %v139_v37 = vstv %s234_s16  ;;  %s240_s22 = sld [smem:[#allocation11 + $0x3]] }
  0x41   :  { %v133_v39 = vadd.f32 %v132_v33, %v129_v29  ;;  %v140_v40 = vmul.f32 %v139_v37, %v385_v7  ;;  %v144_v48 = vstv %s391_s17  ;;  %v104_v54 = vmul.f32 %v103_v41, %v103_v41 }
  0x42   :  { %v123_v42 = vadd.f32 %v122_v32, %v119_v35  ;;  %v150_v43 = vstv %s236_s18 }
  0x43   :  { %v137_v44 = vadd.f32 %v136_v36, %v133_v39  ;;  %v151_v45 = vmul.f32 %v150_v43, %v80_v1  ;;  %v153_v46 = vstv %s237_s19 }
  0x44   :  { %v124_v47 = vsub.f32 %v123_v42, %v120_v38  ;;  %v154_v49 = vmul.f32 %v153_v46, %v84_v2  ;;  %v157_v50 = vstv %s238_s20 }
  0x45   :  { %v141_v51 = vadd.f32 %v140_v40, %v137_v44  ;;  %v158_v52 = vmul.f32 %v157_v50, %v89_v4  ;;  %v161_v53 = vstv %s239_s21  ;;  %v171_v4 = vld [vmem:[#allocation2] sm:$0xf] }
  0x46   :  { %v125_v55 = vmul.f32 %v124_v47, %v124_v47  ;;  %v155_v57 = vadd.f32 %v154_v49, %v151_v45  ;;  %v162_v58 = vmul.f32 %v161_v53, %v385_v7  ;;  %v166_v62 = vstv %s240_s22 }
  0x47   :  { %v145_v59 = vadd.f32 %v144_v48, %v141_v51 }
  0x48   :  { %v159_v60 = vadd.f32 %v158_v52, %v155_v57  ;;  %v126_v63 = vadd.f32 %v125_v55, %v104_v54 }
  0x49   :  { %v146_v61 = vsub.f32 %v145_v59, %v142_v56 }
  0x4a   :  { %v163_v0 = vadd.f32 %v162_v58, %v159_v60 }
  0x4b   :  { %v147_v1 = vmul.f32 %v146_v61, %v146_v61 }
  0x4c   :  { %v167_v5 = vadd.f32 %v166_v62, %v163_v0 }
  0x4d   :  { %v148_v2 = vadd.f32 %v147_v1, %v126_v63 }
  0x4e   :  { %v168_v6 = vsub.f32 %v167_v5, %v164_v3 }
  0x50   :  { %v169_v8 = vmul.f32 %v168_v6, %v168_v6 }
  0x52   :  { %v170_v9 = vadd.f32 %v169_v8, %v148_v2 }
  0x54   :  { %v172_v10 = vadd.f32 %v171_v4, %v170_v9 }
  0x56   :  { %173 = vst [vmem:[#allocation2] sm:$0xf] %v172_v10 }
  0x5d   :  { %v241_v11 = vld.sshfl [vmem:[#allocation2] sm:$0x33 pattern:$0x76325410] }
  0x5e   :  { %v186_v12 = vcombine.high %v241_v11, %v241_v11  ;;  %v190_v7 = vsel %vm189_vm0, %v241_v11, 0.0 }
  0x60   :  { %v191_v13 = vsel %vm189_vm0, %v186_v12, 0.0 }
  0x61   :  { %v192_v14 = vadd.f32 %v191_v13, %v190_v7 }
  0x63   :  { %193 = vadd.xlane.f32.xlu0 %v192_v14 }
  0xec   :  { %v194_v15 = vpop.xlane.xlu0 %193 }
  0xed   :  { %v195_v16 = vrot.slane %v194_v15, 4 }
  0xef   :  { %v196_v17 = vadd.f32 %v195_v16, %v194_v15 }
  0xf1   :  { %v197_v18 = vrot.slane %v196_v17, 2 }
  0xf3   :  { %v198_v19 = vadd.f32 %v197_v18, %v196_v17 }
  0xf5   :  { %v199_v20 = vrot.slane %v198_v19, 1 }
  0xf7   :  { %v200_v21 = vadd.f32 %v199_v20, %v198_v19 }
  0xf9   :  { %242 = vpush %v200_v21 }
 0x12a   :  { %s243_s25 = spop %242 }
 0x12b   :  { %v202_v22 = vstv %s243_s25 }
 0x12c   :  { %204 = vst.msk [vmem:[#allocation12] sm:$0x1] %vm203_vm1, %v202_v22 }
 0x12d   :  { %321 = shalt.err (!%p318_p5)
}
 0x12e   :  { %214 = dma.vmem_to_hbm [thread:$0]  %s212_s24, 16, %s405_s4, [#allocation5]  }
 0x12f   :  { %338 = dma.done.wait [#allocation5], 16  }
 0x130   :  { %339 = vsyncadd [#allocation5], 4294967280 }
 0x131   :  { %218 = vsyncpa [#allocation4], 1 }
 0x132   :  { %219 = vsyncpa [#allocation9], 1 }
 0x133   :  { %220 = vsyncpa [#allocation5], 1 }
 0x134   :  { %221 = vsyncpa [#allocation6], 1 }
 0x135   :  { %222 = vsyncpa [#allocation7], 1 }

</bundles_post_ra>
